<compile_context>
chip_gen: v7x
topology: tpu7x:2x2x1
jax: 0.10.0
libtpu: 0.0.40
codegen_flags: <defaults>
</compile_context>

<pallas_src>
import functools

import jax
import jax.numpy as jnp
from jax.experimental import pallas as pl
from jax.experimental.pallas import tpu as pltpu

EPS = 1e-5


def _conv3_im2col(x_f32, w_ref, L):
    """3-tap conv along the row axis of a (rows, Ci) tile as ONE MXU matmul.

    rows = whole sequences of length L, so the +-1 taps never cross the tile.
    The shifted copies are built with pltpu.roll (XLU slot, otherwise idle),
    masked at sequence boundaries, cast to bf16 and concatenated along lanes
    to a (rows, 3*Ci) operand; the weight is (3*Ci, Co) bf16, tap-major rows.
    """
    R, Ci = x_f32.shape
    pos = jax.lax.broadcasted_iota(jnp.int32, (R, 1), 0) % L
    not_first = pos != 0            # row l-1 exists within the same sequence
    not_last = pos != (L - 1)       # row l+1 exists within the same sequence

    x_c = x_f32.astype(jnp.bfloat16)
    x_m1 = jnp.where(not_first, pltpu.roll(x_f32, shift=1, axis=0),
                     0.0).astype(jnp.bfloat16)
    x_p1 = jnp.where(not_last, pltpu.roll(x_f32, shift=R - 1, axis=0),
                     0.0).astype(jnp.bfloat16)
    xcat = jnp.concatenate([x_m1, x_c, x_p1], axis=1)          # (R, 3*Ci) bf16
    return jnp.dot(xcat, w_ref[...], preferred_element_type=jnp.float32)


def _partial_stats(y):
    """Per-tile sum and sum-of-squares over rows -> (1, 2, Co) f32."""
    s = jnp.sum(y, axis=0, keepdims=True)
    ss = jnp.sum(y * y, axis=0, keepdims=True)
    return jnp.concatenate([s, ss], axis=0)[None]


def _pass1_kernel(x_ref, w1_ref, y1_ref, st1_ref, *, L):
    y = _conv3_im2col(x_ref[...], w1_ref, L)
    y1_ref[...] = y
    st1_ref[...] = _partial_stats(y)


def _pass2_kernel(y1_ref, sc1_ref, sh1_ref, w2_ref, y2_ref, st2_ref, *, L):
    # BN1 folded into one FMA, ReLU, then conv2 (bf16 operands inside im2col).
    h = jnp.maximum(y1_ref[...] * sc1_ref[...] + sh1_ref[...], 0.0)
    y = _conv3_im2col(h, w2_ref, L)
    y2_ref[...] = y
    st2_ref[...] = _partial_stats(y)


def _pass3_kernel(y2_ref, sc2_ref, sh2_ref, x_ref, o_ref):
    # BN2 (folded) + residual + ReLU.
    o_ref[...] = jnp.maximum(
        y2_ref[...] * sc2_ref[...] + sh2_ref[...] + x_ref[...], 0.0
    ).astype(o_ref.dtype)


def basic_block_pallas(x_ncl, params, *, target_tile_rows=None):
    """BasicBlock forward.  x_ncl: (N, C, L) float32 (PyTorch layout)."""
    N, C, L = x_ncl.shape
    P = params["w1"].shape[0]
    assert P == C, "residual add requires planes == inplanes (stride=1)"
    NL = N * L

    # ---- tile sizing --------------------------------------------------------
    if target_tile_rows is None:
        try:    # bigger tiles on 128-MiB v5e/v6e than on 64-MiB v7x
            vmem_cap = pltpu.get_tpu_info().vmem_capacity_bytes
        except Exception:
            vmem_cap = 64 << 20
        target_tile_rows = 2048 if vmem_cap > (96 << 20) else 1024

    # Tiles are whole batch sequences (TB sequences of L rows each): the conv
    # needs no halo and the per-row position masks stay tile-local.
    valid = [tb for tb in range(1, N + 1)
             if N % tb == 0 and ((tb * L) % 8 == 0 or tb == N)]
    fitting = [tb for tb in valid if tb * L <= target_tile_rows]
    TB = max(fitting) if fitting else min(valid)
    R = TB * L
    num_tiles = N // TB

    # ---- layout plumbing (once, at the boundary) ----------------------------
    x2d = jnp.transpose(x_ncl, (0, 2, 1)).reshape(NL, C)       # rows x channels

    def cat_weight(w):   # (Co, Ci, 3) -> (3*Ci, Co), tap-major rows
        return jnp.transpose(w, (2, 1, 0)).reshape(3 * w.shape[1], w.shape[0])

    w1 = cat_weight(params["w1"]).astype(jnp.bfloat16)
    w2 = cat_weight(params["w2"]).astype(jnp.bfloat16)

    # ---- specs / compiler params -------------------------------------------
    row_c = pl.BlockSpec((R, C), lambda i: (i, 0))
    row_p = pl.BlockSpec((R, P), lambda i: (i, 0))
    w1_spec = pl.BlockSpec((3 * C, P), lambda i: (0, 0))
    w2_spec = pl.BlockSpec((3 * P, P), lambda i: (0, 0))
    st_spec = pl.BlockSpec((1, 2, P), lambda i: (i, 0, 0))
    vec_spec = pl.BlockSpec((1, P), lambda i: (0, 0))

    cmax = max(C, P)
    tile_f32 = R * cmax * 4
    need = (4 * tile_f32                 # double-buffered in & out activation tiles
            + 4 * tile_f32               # rolls / conv accumulator / h temporaries
            + R * 3 * cmax * 2           # bf16 im2col operand
            + 4 * 3 * cmax * cmax * 2)   # double-buffered bf16 weights
    vlim = int(min(40 << 20, max(16 << 20, 2 * need)))   # headroom under v7x 64 MiB
    cparams = pltpu.CompilerParams(
        dimension_semantics=("parallel",),               # independent row tiles
        vmem_limit_bytes=vlim)

    stats_shape = jax.ShapeDtypeStruct((num_tiles, 2, P), jnp.float32)
    act_shape = jax.ShapeDtypeStruct((NL, P), jnp.float32)

    def fold_bn(st, gamma, beta):
        # Combine per-tile partial sums; fold batch stats + gamma/beta into one
        # scale/shift.  Tiny (P,)-sized XLA ops between the passes.
        s = jnp.sum(st[:, 0, :], axis=0)
        ss = jnp.sum(st[:, 1, :], axis=0)
        mean = s / NL
        var = ss / NL - mean * mean        # biased (training-mode) variance
        scale = gamma.astype(jnp.float32) * jax.lax.rsqrt(var + EPS)
        shift = beta.astype(jnp.float32) - mean * scale
        return scale.reshape(1, P), shift.reshape(1, P)

    # ---- pass 1: conv1 + partial stats --------------------------------------
    y1, st1 = pl.pallas_call(
        functools.partial(_pass1_kernel, L=L),
        out_shape=(act_shape, stats_shape),
        grid=(num_tiles,),
        in_specs=[row_c, w1_spec],
        out_specs=(row_p, st_spec),
        compiler_params=cparams,
    )(x2d, w1)
    sc1, sh1 = fold_bn(st1, params["g1"], params["b1"])

    # ---- pass 2: BN1 + ReLU + conv2 + partial stats --------------------------
    y2, st2 = pl.pallas_call(
        functools.partial(_pass2_kernel, L=L),
        out_shape=(act_shape, stats_shape),
        grid=(num_tiles,),
        in_specs=[row_p, vec_spec, vec_spec, w2_spec],
        out_specs=(row_p, st_spec),
        compiler_params=cparams,
    )(y1, sc1, sh1, w2)
    sc2, sh2 = fold_bn(st2, params["g2"], params["b2"])

    # ---- pass 3: BN2 + residual + ReLU ---------------------------------------
    # TODO(synk): emit bf16 here if the downstream consumer accepts it (halves
    #             output HBM writeback on this memory-bound block).
    out2d = pl.pallas_call(
        _pass3_kernel,
        out_shape=jax.ShapeDtypeStruct((NL, P), jnp.float32),
        grid=(num_tiles,),
        in_specs=[row_p, vec_spec, vec_spec, row_c],
        out_specs=row_p,
        compiler_params=cparams,
    )(y2, sc2, sh2, x2d)

    return jnp.transpose(out2d.reshape(N, L, P), (0, 2, 1))    # -> (N, C, L)


def basic_block_ref(x, w1, g1, b1, w2, g2, b2):
    """Pure-JAX reference (PyTorch NCL layout), conv operands in bf16 with f32
    accumulation to mirror the kernel's MXU precision."""
    def conv(xi, w):
        return jax.lax.conv_general_dilated(
            xi.astype(jnp.bfloat16), w.astype(jnp.bfloat16),
            window_strides=(1,), padding=((1, 1),),
            dimension_numbers=("NCH", "OIH", "NCH"),
            preferred_element_type=jnp.float32)

    def bn(y, g, b):
        m = jnp.mean(y, axis=(0, 2), keepdims=True)
        v = jnp.mean((y - m) ** 2, axis=(0, 2), keepdims=True)
        return (y - m) / jnp.sqrt(v + EPS) * g.reshape(1, -1, 1) + b.reshape(1, -1, 1)

    out = jax.nn.relu(bn(conv(x, w1), g1, b1))
    out = bn(conv(out, w2), g2, b2)
    return jax.nn.relu(out + x)


if __name__ == "__main__":
    N, C, L = 4, 8, 16          # inplanes = planes = 8, stride = 1
    key = jax.random.PRNGKey(0)
    kx, kw1, kw2, kg1, kb1, kg2, kb2 = jax.random.split(key, 7)

    x = jax.random.normal(kx, (N, C, L), dtype=jnp.float32)
    params = {
        "w1": jax.random.normal(kw1, (C, C, 3), dtype=jnp.float32) * 0.2,
        "w2": jax.random.normal(kw2, (C, C, 3), dtype=jnp.float32) * 0.2,
        "g1": 1.0 + 0.1 * jax.random.normal(kg1, (C,), dtype=jnp.float32),
        "b1": 0.1 * jax.random.normal(kb1, (C,), dtype=jnp.float32),
        "g2": 1.0 + 0.1 * jax.random.normal(kg2, (C,), dtype=jnp.float32),
        "b2": 0.1 * jax.random.normal(kb2, (C,), dtype=jnp.float32),
    }

    ref = basic_block_ref(x, params["w1"], params["g1"], params["b1"],
                          params["w2"], params["g2"], params["b2"])

    # Auto tile sizing (whole batch fits in one tile at this size) ...
    out_single = jax.block_until_ready(basic_block_pallas(x, params))
    # ... and forced multi-tile path (one sequence per tile, grid=(N,)) to
    # exercise the tiled multi-pass BatchNorm and partial-stat combine.
    out_tiled = jax.block_until_ready(
        basic_block_pallas(x, params, target_tile_rows=L))

    for out in (out_single, out_tiled):
        assert out.shape == (N, C, L)
        max_err = jnp.max(jnp.abs(out - ref))
        assert jnp.allclose(out, ref, atol=1e-2, rtol=1e-2), f"max err {max_err}"

    print("KERNEL_OK")
</pallas_src>

<mosaic_0001>
module attributes {stable_mosaic.version = 11 : i64} {
  func.func @_pass1_kernel(%arg0: i32, %arg1: memref<64x8xf32, #tpu.memory_space<vmem>>, %arg2: memref<24x8xbf16, #tpu.memory_space<vmem>>, %arg3: memref<64x8xf32, #tpu.memory_space<vmem>>, %arg4: memref<1x2x8xf32, #tpu.memory_space<vmem>>) attributes {dimension_semantics = [#tpu.dimension_semantics<parallel>], iteration_bounds = array<i64: 1>, scalar_prefetch = 0 : i64, scratch_operands = 0 : i64, tpu.core_type = #tpu.core_type<tc>, window_params = [{transform_indices = @transform_0, window_bounds = array<i64: 64, 8>}, {pipeline_mode = #tpu.pipeline_mode<synchronous>, transform_indices = @transform_1, window_bounds = array<i64: 24, 8>}, {transform_indices = @transform_2, window_bounds = array<i64: 64, 8>}, {transform_indices = @transform_3, window_bounds = array<i64: 1, 2, 8>}]} {
    %c0 = arith.constant 0 : index
    %c0_0 = arith.constant 0 : index
    %0 = vector.load %arg1[%c0, %c0_0] : memref<64x8xf32, #tpu.memory_space<vmem>>, vector<64x8xf32>
    %1 = tpu.iota {dimensions = array<i32: 0>} : vector<64x1xi32>
    %c16_i32 = arith.constant 16 : i32
    %c0_i32 = arith.constant 0 : i32
    %2 = arith.cmpi eq, %c16_i32, %c0_i32 : i32
    %c1_i32 = arith.constant 1 : i32
    %3 = arith.select %2, %c1_i32, %c16_i32 : i32
    %4 = vector.broadcast %3 : i32 to vector<64x1xi32>
    %5 = arith.remsi %1, %4 : vector<64x1xi32>
    %c0_i32_1 = arith.constant 0 : i32
    %6 = vector.broadcast %c0_i32_1 : i32 to vector<64x1xi32>
    %7 = arith.cmpi ne, %5, %6 : vector<64x1xi32>
    %c0_i32_2 = arith.constant 0 : i32
    %8 = vector.broadcast %c0_i32_2 : i32 to vector<64x1xi32>
    %9 = arith.cmpi slt, %5, %8 : vector<64x1xi32>
    %c0_i32_3 = arith.constant 0 : i32
    %10 = arith.cmpi slt, %3, %c0_i32_3 : i32
    %11 = vector.broadcast %10 : i1 to vector<64x1xi1>
    %12 = vector.broadcast %11 : vector<64x1xi1> to vector<64x1xi1>
    %13 = arith.xori %9, %12 : vector<64x1xi1>
    %14 = arith.andi %13, %7 : vector<64x1xi1>
    %15 = vector.broadcast %3 : i32 to vector<64x1xi32>
    %16 = arith.addi %5, %15 : vector<64x1xi32>
    %17 = arith.select %14, %16, %5 : vector<64x1xi1>, vector<64x1xi32>
    %c0_i32_4 = arith.constant 0 : i32
    %18 = vector.broadcast %c0_i32_4 : i32 to vector<64x1xi32>
    %19 = arith.cmpi ne, %17, %18 : vector<64x1xi32>
    %c15_i32 = arith.constant 15 : i32
    %20 = vector.broadcast %c15_i32 : i32 to vector<64x1xi32>
    %21 = arith.cmpi ne, %17, %20 : vector<64x1xi32>
    %22 = arith.truncf %0 : vector<64x8xf32> to vector<64x8xbf16>
    %c1_i32_5 = arith.constant 1 : i32
    %23 = tpu.dynamic_rotate %0 by %c1_i32_5 dim 0 : vector<64x8xf32>, i32 -> vector<64x8xf32>
    %cst = arith.constant 0.000000e+00 : f32
    %24 = vector.shape_cast %19 : vector<64x1xi1> to vector<64x1xi1>
    %25 = vector.broadcast %24 : vector<64x1xi1> to vector<64x8xi1>
    %26 = vector.broadcast %cst : f32 to vector<64x8xf32>
    %27 = arith.select %25, %23, %26 : vector<64x8xi1>, vector<64x8xf32>
    %28 = arith.truncf %27 : vector<64x8xf32> to vector<64x8xbf16>
    %c63_i32 = arith.constant 63 : i32
    %29 = tpu.dynamic_rotate %0 by %c63_i32 dim 0 : vector<64x8xf32>, i32 -> vector<64x8xf32>
    %cst_6 = arith.constant 0.000000e+00 : f32
    %30 = vector.shape_cast %21 : vector<64x1xi1> to vector<64x1xi1>
    %31 = vector.broadcast %30 : vector<64x1xi1> to vector<64x8xi1>
    %32 = vector.broadcast %cst_6 : f32 to vector<64x8xf32>
    %33 = arith.select %31, %29, %32 : vector<64x8xi1>, vector<64x8xf32>
    %34 = arith.truncf %33 : vector<64x8xf32> to vector<64x8xbf16>
    %35 = tpu.concatenate %28, %22, %34 in 1 : vector<64x8xbf16>, vector<64x8xbf16>, vector<64x8xbf16> -> vector<64x24xbf16>
    %c0_7 = arith.constant 0 : index
    %c0_8 = arith.constant 0 : index
    %36 = vector.load %arg2[%c0_7, %c0_8] : memref<24x8xbf16, #tpu.memory_space<vmem>>, vector<24x8xbf16>
    %cst_9 = arith.constant dense<0.000000e+00> : vector<64x8xf32>
    %37 = tpu.matmul %35, %36, %cst_9 {dimension_numbers = #tpu.dot_dimension_numbers<[1], [0], [0], [1], [0, 0, 1, 1], [], []>} : vector<64x24xbf16>, vector<24x8xbf16>, vector<64x8xf32> -> vector<64x8xf32>
    %c0_10 = arith.constant 0 : index
    %c0_11 = arith.constant 0 : index
    %38 = vector.load %arg3[%c0_10, %c0_11] : memref<64x8xf32, #tpu.memory_space<vmem>>, vector<64x8xf32>
    tpu.vector_store %arg3[%c0_10, %c0_11], %37 {strides = array<i32>} : memref<64x8xf32, #tpu.memory_space<vmem>>, vector<64x8xf32>,
    %cst_12 = arith.constant dense<0.000000e+00> : vector<8xf32>
    %39 = vector.multi_reduction <add>, %37, %cst_12 [0] : vector<64x8xf32> to vector<8xf32>
    %40 = vector.shape_cast %39 : vector<8xf32> to vector<1x8xf32>
    %41 = arith.mulf %37, %37 : vector<64x8xf32>
    %cst_13 = arith.constant dense<0.000000e+00> : vector<8xf32>
    %42 = vector.multi_reduction <add>, %41, %cst_13 [0] : vector<64x8xf32> to vector<8xf32>
    %43 = vector.shape_cast %42 : vector<8xf32> to vector<1x8xf32>
    %44 = tpu.concatenate %40, %43 in 0 : vector<1x8xf32>, vector<1x8xf32> -> vector<2x8xf32>
    %45 = vector.shape_cast %44 : vector<2x8xf32> to vector<1x2x8xf32>
    %c0_14 = arith.constant 0 : index
    %c0_15 = arith.constant 0 : index
    %c0_16 = arith.constant 0 : index
    %46 = vector.load %arg4[%c0_14, %c0_15, %c0_16] : memref<1x2x8xf32, #tpu.memory_space<vmem>>, vector<1x2x8xf32>
    tpu.vector_store %arg4[%c0_14, %c0_15, %c0_16], %45 {strides = array<i32>} : memref<1x2x8xf32, #tpu.memory_space<vmem>>, vector<1x2x8xf32>,
    return
  }
  func.func @transform_0(%arg0: i32) -> (i32, i32) {
    %c0_i32 = arith.constant 0 : i32
    %c0_i32_0 = arith.constant 0 : i32
    return %arg0, %c0_i32 : i32, i32
  }
  func.func @transform_1(%arg0: i32) -> (i32, i32) {
    %c0_i32 = arith.constant 0 : i32
    %c0_i32_0 = arith.constant 0 : i32
    %c0_i32_1 = arith.constant 0 : i32
    return %c0_i32, %c0_i32_0 : i32, i32
  }
  func.func @transform_2(%arg0: i32) -> (i32, i32) {
    %c0_i32 = arith.constant 0 : i32
    %c0_i32_0 = arith.constant 0 : i32
    return %arg0, %c0_i32 : i32, i32
  }
  func.func @transform_3(%arg0: i32) -> (i32, i32, i32) {
    %c0_i32 = arith.constant 0 : i32
    %c0_i32_0 = arith.constant 0 : i32
    %c0_i32_1 = arith.constant 0 : i32
    return %arg0, %c0_i32, %c0_i32_0 : i32, i32, i32
  }
}

</mosaic_0001>

<bundles_post_ra>
// kernel: tpu_custom_call.1
= control target key start
LH: loop header
LB: loop body
LE: loop exit
PB: predicated region body
PF: predicated region fallthrough
CT: control target
= control target key end

     0   :  { %v23_v3 = vlaneseq  ;;  %s513_s26 = smov 8   ;;  %s748_s0 = inlined_call_operand.vmem [shape: f32[64,8], index: 0, kind: input, shape index: {}]   ;;  %s749_s1 = inlined_call_operand.vmem [shape: bf16[24,8], index: 1, kind: input, shape index: {}]   ;;  %s750_s2 = inlined_call_operand.vmem [shape: f32[64,8], index: 2, kind: output, shape index: {0}]   ;;  %s751_s3 = inlined_call_operand.hbm [shape: f32[1,2,8], index: 3, kind: output, shape index: {1}]  }
   0x1   :  { %v539_v0 = vld [vmem:[%s748_s0] sm:$0xff]  ;;  %v544_v1 = vld [vmem:[%s748_s0 + $0x8] sm:$0xff]  ;;  %v549_v2 = vld [vmem:[%s748_s0 + $0x10] sm:$0xff] }
   0x2   :  { %v144_v4 = vpack.c.bf16 %v544_v1, %v539_v0  ;;  %v148_v5 = vrot.slane %v539_v0, 7  ;;  %v557_v6 = vld [vmem:[%s748_s0 + $0x18] sm:$0xff]  ;;  %v562_v7 = vld [vmem:[%s748_s0 + $0x20] sm:$0xff]  ;;  %v149_v8 = vrot.slane %v544_v1, 7  ;;  %v194_v9 = vrot.slane %v544_v1, 1  ;;  %v572_v12 = vld [vmem:[%s748_s0 + $0x28] sm:$0xff] }
   0x3   :  { %v566_v10 = vshrl.u32 %v23_v3, 7  ;;  %v195_v11 = vrot.slane %v549_v2, 1  ;;  %v487_v13 = vld [vmem:[%s749_s1] sm:$0xff]   ;;  %v193_v14 = vrot.slane %v539_v0, 1  ;;  %v145_v15 = vpack.c.bf16 %v557_v6, %v549_v2  ;;  %v586_v18 = vld [vmem:[%s748_s0 + $0x30] sm:$0xff]  ;;  %v594_v21 = vld [vmem:[%s748_s0 + $0x38] sm:$0xff] }
   0x4   :  { %242 = vrot.lane.b32.xlu0 %v144_v4, %s513_s26  ;;  %v196_v16 = vrot.slane %v557_v6, 1  ;;  %v197_v17 = vrot.slane %v562_v7, 1  ;;  %466 = vmatprep.subr.bf16.mxu0 %v487_v13  ;;  %v151_v23 = vrot.slane %v557_v6, 7  ;;  %v146_v24 = vpack.c.bf16 %v572_v12, %v562_v7 }
   0x5   :  { %v25_v19 = vadd.s32 8, %v566_v10  ;;  %vm201_vm0 = vcmp.lt.s32.totalorder %v566_v10, 7  ;;  %v27_v20 = vadd.s32 24, %v566_v10  ;;  %478 = vmatprep.subr.bf16.mxu1 %v487_v13  ;;  %v153_v25 = vrot.slane %v572_v12, 7  ;;  %467 = vmatpush3.bf16.msra.mxu0 %v487_v13 }
   0x6   :  { %v207_v22 = vsel %vm201_vm0, %v194_v9, %v195_v11 }
   0x7   :  { %9 = vsyncpa [#allocation3], 0  ;;  %v43_v26 = vand.u32 15, %v25_v19  ;;  %v57_v27 = vand.u32 15, %v27_v20  ;;  %v205_v28 = vsel %vm201_vm0, %v196_v16, %v197_v17  ;;  %v198_v29 = vrot.slane %v572_v12, 1  ;;  %480 = vmatpush3.bf16.msra.mxu1 %v487_v13  ;;  %s514_s0 = smov 16  }
   0x8   :  { %v208_v30 = vsel %vm201_vm0, %v193_v14, %v194_v9  ;;  %244 = vrot.lane.b32.xlu0 %v145_v15, %s513_s26  ;;  %v206_v31 = vsel %vm201_vm0, %v195_v11, %v196_v16  ;;  %v199_v32 = vrot.slane %v586_v18, 1  ;;  %v200_v33 = vrot.slane %v594_v21, 1  ;;  %v488_v53 = vld [vmem:[%s749_s1 + $0x8] ss:$0 sps:$4 sm:$0xff]  }
   0x9   :  { %vm137_vm1 = vcmp.ne.s32.totalorder %v43_v26, 15  ;;  %vm139_vm2 = vcmp.ne.s32.totalorder %v57_v27, 15  ;;  %v155_v34 = vrot.slane %v594_v21, 7  ;;  %v29_v35 = vadd.s32 40, %v566_v10 }
   0xa   :  { %v227_v36 = vsel %vm137_vm1, %v207_v22, 0.0  ;;  %v229_v37 = vsel %vm139_vm2, %v205_v28, 0.0  ;;  %v204_v38 = vsel %vm201_vm0, %v197_v17, %v198_v29  ;;  %v31_v39 = vadd.s32 56, %v566_v10 }
   0xb   :  { %v234_v40 = vpack.c.bf16 %v227_v36, %v208_v30  ;;  %v235_v41 = vpack.c.bf16 %v229_v37, %v206_v31  ;;  %v71_v42 = vand.u32 15, %v29_v35  ;;  %v203_v43 = vsel %vm201_vm0, %v198_v29, %v199_v32 }
   0xc   :  { %246 = vrot.lane.b32.xlu0 %v146_v24, %s513_s26  ;;  %v85_v44 = vand.u32 15, %v31_v39  ;;  %v209_v45 = vsel %vm201_vm0, %v200_v33, %v193_v14  ;;  %v36_v46 = vand.u32 15, %v566_v10  ;;  %vm156_vm3 = vcmp.lt.s32.totalorder %v566_v10, 1 }
   0xd   :  { %254 = vrot.lane.b32.xlu1 %v234_v40, %s514_s0  ;;  %vm141_vm4 = vcmp.ne.s32.totalorder %v71_v42, 15  ;;  %v163_v47 = vsel %vm156_vm3, %v148_v5, %v149_v8  ;;  %v164_v48 = vsel %vm156_vm3, %v155_v34, %v148_v5  ;;  %v26_v49 = vadd.s32 16, %v566_v10 }
   0xe   :  { %v231_v50 = vsel %vm141_vm4, %v203_v43, 0.0  ;;  %vm632_vm5 = vcmp.ne.s32.totalorder %v85_v44, 15  ;;  %vm128_vm6 = vcmp.ne.s32.totalorder %v36_v46, 0  ;;  %v150_v52 = vrot.slane %v549_v2, 7 }
   0xf   :  { %v154_v54 = vrot.slane %v586_v18, 7  ;;  %v236_v55 = vpack.c.bf16 %v231_v50, %v204_v38  ;;  %v181_v56 = vsel %vm128_vm6, %v164_v48, 0.0  ;;  %v50_v57 = vand.u32 15, %v26_v49 }
  0x10   :  { %v147_v58 = vpack.c.bf16 %v594_v21, %v586_v18  ;;  %v189_v59 = vpack.c.bf16 %v163_v47, %v181_v56  ;;  %v161_v60 = vsel %vm156_vm3, %v150_v52, %v151_v23  ;;  %v162_v61 = vsel %vm156_vm3, %v149_v8, %v150_v52 }
  0x11   :  { %256 = vrot.lane.b32.xlu1 %v235_v41, %s514_s0  ;;  %258 = vrot.lane.b32.xlu0 %v236_v55, %s514_s0  ;;  %v202_v62 = vsel %vm201_vm0, %v199_v32, %v200_v33  ;;  %v233_v63 = vsel %vm632_vm5, %v209_v45, 0.0  ;;  %vm130_vm7 = vcmp.ne.s32.totalorder %v50_v57, 0  ;;  %vm305_vm8 = vcmask 1043456  }
  0x12   :  { %v183_v0 = vsel %vm130_vm7, %v162_v61, 0.0  ;;  %482 = vmatprep.subr.msk.bf16.mxu0 %vm305_vm8, %v488_v53  ;;  %v307_v2 = vsel %vm305_vm8, %v488_v53, 0  ;;  %v28_v1 = vadd.s32 32, %v566_v10  ;;  %v152_v3 = vrot.slane %v562_v7, 7  ;;  %483 = vmatprep.subr.msk.bf16.mxu1 %vm305_vm8, %v488_v53 }
  0x13   :  { %v190_v4 = vpack.c.bf16 %v161_v60, %v183_v0  ;;  %469 = vmatpush3.bf16.msra.mxu0 %v307_v2  ;;  %v30_v5 = vadd.s32 48, %v566_v10  ;;  %v157_v8 = vsel %vm156_vm3, %v154_v54, %v155_v34  ;;  %v158_v9 = vsel %vm156_vm3, %v153_v25, %v154_v54  ;;  %481 = vmatpush3.bf16.msra.mxu1 %v307_v2 }
  0x14   :  { %v64_v11 = vand.u32 15, %v28_v1  ;;  %v159_v7 = vsel %vm156_vm3, %v152_v3, %v153_v25  ;;  %v160_v13 = vsel %vm156_vm3, %v151_v23, %v152_v3  ;;  %v237_v14 = vpack.c.bf16 %v233_v63, %v202_v62 }
  0x15   :  { %248 = vrot.lane.b32.xlu1 %v147_v58, %s513_s26  ;;  %v78_v15 = vand.u32 15, %v30_v5  ;;  %vm262_vm11 = vcmask 64512   ;;  %vm275_vm12 = vcmask 130048   ;;  %vm296_vm13 = vcmask 195584  }
  0x16   :  { %vm132_vm9 = vcmp.ne.s32.totalorder %v64_v11, 0  ;;  %vm432_vm14 = vcmask 1040384   ;;  %vm434_vm15 = vcmask 58368  }
  0x17   :  { %v185_v16 = vsel %vm132_vm9, %v160_v13, 0.0  ;;  %vm134_vm10 = vcmp.ne.s32.totalorder %v78_v15, 0 }
  0x18   :  { %v191_v17 = vpack.c.bf16 %v159_v7, %v185_v16  ;;  %v187_v18 = vsel %vm134_vm10, %v158_v9, 0.0 }
  0x19   :  { %260 = vrot.lane.b32.xlu1 %v237_v14, %s514_s0  ;;  %v192_v12 = vpack.c.bf16 %v157_v8, %v187_v18 }
  0x76   :  { %v243_v19 = vpop.permute.xlu0 %242 }
  0x77   :  { %v265_v6 = vsel %vm262_vm11, %v189_v59, %v243_v19 }
  0x7a   :  { %v245_v20 = vpop.permute.xlu0 %244 }
  0x7b   :  { %v268_v23 = vsel %vm262_vm11, %v190_v4, %v245_v20 }
  0x7e   :  { %v247_v10 = vpop.permute.xlu0 %246 }
  0x7f   :  { %v255_v21 = vpop.permute.xlu1 %254  ;;  %v271_v24 = vsel %vm262_vm11, %v191_v17, %v247_v10 }
  0x80   :  { %v277_v22 = vsel %vm275_vm12, %v265_v6, %v255_v21 }
  0x81   :  { %470 = vmatprep.mubr.msk.bf16.mxu0 %vm296_vm13, %v277_v22 }
  0x83   :  { %v257_v25 = vpop.permute.xlu1 %256  ;;  %v259_v26 = vpop.permute.xlu0 %258 }
  0x84   :  { %v279_v27 = vsel %vm275_vm12, %v268_v23, %v257_v25  ;;  %v281_v28 = vsel %vm275_vm12, %v271_v24, %v259_v26 }
  0x85   :  { %471 = vmatmul.mubr.msk.bf16.vlgmr.msra.gmra.mrb[0].mxu0 %vm296_vm13, %v279_v27  ;;  %474 = vmatprep.mubr.msk.bf16.mxu1 %vm296_vm13, %v281_v28 }
  0x87   :  { %v249_v29 = vpop.permute.xlu1 %248 }
  0x88   :  { %v274_v30 = vsel %vm262_vm11, %v192_v12, %v249_v29 }
  0x8b   :  { %v261_v31 = vpop.permute.xlu1 %260 }
  0x8c   :  { %v283_v32 = vsel %vm275_vm12, %v274_v30, %v261_v31 }
  0x8d   :  { %475 = vmatmul.mubr.msk.bf16.vlgmr.msra.gmra.mrb[0].mxu1 %vm296_vm13, %v283_v32 }
 0x158   :  { %v472_v33 = vpop.f32.mrb[0].mxu0 }
 0x159   :  { %376 = vst.msk [vmem:[%s750_s2 + $0x10] sm:$0xff] %vm262_vm11, %v472_v33  ;;  %v343_v34 = vpop.f32.mrb[1].mxu0  ;;  %v405_v38 = vmul.f32 %v472_v33, %v472_v33  ;;  %v385_v43 = vsel %vm262_vm11, %v472_v33, 0.0 }
 0x15a   :  { %374 = vst.msk [vmem:[%s750_s2] sm:$0xff] %vm262_vm11, %v343_v34  ;;  %v403_v35 = vmul.f32 %v343_v34, %v343_v34  ;;  %v473_v36 = vpop.f32.mrb[2].mxu0  ;;  %v382_v39 = vsel %vm262_vm11, %v343_v34, 0.0 }
 0x15b   :  { %377 = vst.msk [vmem:[%s750_s2 + $0x18] sm:$0xff] %vm262_vm11, %v473_v36  ;;  %v346_v37 = vpop.f32.mrb[3].mxu0  ;;  %v406_v45 = vmul.f32 %v473_v36, %v473_v36  ;;  %v414_v49 = vsel %vm262_vm11, %v405_v38, 0.0  ;;  %v387_v50 = vsel %vm262_vm11, %v473_v36, 0.0 }
 0x15c   :  { %375 = vst.msk [vmem:[%s750_s2 + $0x8] sm:$0xff] %vm262_vm11, %v346_v37  ;;  %v383_v40 = vsel %vm262_vm11, %v346_v37, 0.0  ;;  %v404_v41 = vmul.f32 %v346_v37, %v346_v37  ;;  %v411_v44 = vsel %vm262_vm11, %v403_v35, 0.0 }
 0x15d   :  { %v384_v42 = vadd.f32 %v383_v40, %v382_v39  ;;  %v416_v55 = vsel %vm262_vm11, %v406_v45, 0.0 }
 0x15e   :  { %v412_v46 = vsel %vm262_vm11, %v404_v41, 0.0 }
 0x15f   :  { %v386_v47 = vadd.f32 %v385_v43, %v384_v42  ;;  %v413_v48 = vadd.f32 %v412_v46, %v411_v44 }
 0x160   :  { %v476_v51 = vpop.f32.mrb[0].mxu1 }
 0x161   :  { %v415_v52 = vadd.f32 %v414_v49, %v413_v48  ;;  %380 = vst.msk [vmem:[%s750_s2 + $0x30] sm:$0xff] %vm262_vm11, %v476_v51  ;;  %v359_v53 = vpop.f32.mrb[1].mxu1  ;;  %v388_v54 = vadd.f32 %v387_v50, %v386_v47  ;;  %v409_v62 = vmul.f32 %v476_v51, %v476_v51  ;;  %v393_v4 = vsel %vm262_vm11, %v476_v51, 0.0 }
 0x162   :  { %378 = vst.msk [vmem:[%s750_s2 + $0x20] sm:$0xff] %vm262_vm11, %v359_v53  ;;  %v389_v56 = vsel %vm262_vm11, %v359_v53, 0.0  ;;  %v407_v57 = vmul.f32 %v359_v53, %v359_v53  ;;  %v477_v58 = vpop.f32.mrb[2].mxu1 }
 0x163   :  { %v390_v59 = vadd.f32 %v389_v56, %v388_v54  ;;  %v417_v60 = vadd.f32 %v416_v55, %v415_v52  ;;  %381 = vst.msk [vmem:[%s750_s2 + $0x38] sm:$0xff] %vm262_vm11, %v477_v58  ;;  %v362_v61 = vpop.f32.mrb[3].mxu1  ;;  %v410_v5 = vmul.f32 %v477_v58, %v477_v58  ;;  %v422_v7 = vsel %vm262_vm11, %v409_v62, 0.0 }
 0x164   :  { %v418_v63 = vsel %vm262_vm11, %v407_v57, 0.0  ;;  %379 = vst.msk [vmem:[%s750_s2 + $0x28] sm:$0xff] %vm262_vm11, %v362_v61  ;;  %v391_v0 = vsel %vm262_vm11, %v362_v61, 0.0  ;;  %v408_v2 = vmul.f32 %v362_v61, %v362_v61  ;;  %v395_v13 = vsel %vm262_vm11, %v477_v58, 0.0  ;;  %s515_s2 = smov [#allocation2]  }
 0x165   :  { %v419_v1 = vadd.f32 %v418_v63, %v417_v60  ;;  %v392_v3 = vadd.f32 %v391_v0, %v390_v59  ;;  %v424_v16 = vsel %vm262_vm11, %v410_v5, 0.0  ;;  %s444_s21 = sshll.u32 %s515_s2, 4  ;;  %s445_s21 = int_to_ptr.vmem [resolvable:$true] %s444_s21 }
 0x166   :  { %v420_v8 = vsel %vm262_vm11, %v408_v2, 0.0  ;;  %s489_s22 = scalar_lea.vmem %s445_s21, 32  ;;  %p494_p1 = scmp.lt.s32.totalorder %s445_s21, %s445_s21 }
 0x167   :  { %v394_v9 = vadd.f32 %v393_v4, %v392_v3  ;;  %v421_v11 = vadd.f32 %v420_v8, %v419_v1  ;;  %p490_p0 = scmp.ne.s32.totalorder %s445_s21, %s489_s22  ;;  %p495_p2 = scmp.lt.s32.totalorder %s489_s22, %s489_s22 }
 0x169   :  { %v396_v14 = vadd.f32 %v395_v13, %v394_v9  ;;  %v423_v15 = vadd.f32 %v422_v7, %v421_v11  ;;  %p496_p3 = por %p495_p2, %p494_p1 }
 0x16b   :  { %v397_v17 = vrot.slane %v396_v14, 4  ;;  %v425_v18 = vadd.f32 %v424_v16, %v423_v15  ;;  %p497_p4 = pnand %p496_p3, %p490_p0 }
 0x16d   :  { %v398_v12 = vadd.f32 %v397_v17, %v396_v14  ;;  %v426_v19 = vrot.slane %v425_v18, 4 }
 0x16f   :  { %v399_v20 = vrot.slane %v398_v12, 2  ;;  %v427_v6 = vadd.f32 %v426_v19, %v425_v18 }
 0x171   :  { %v400_v10 = vadd.f32 %v399_v20, %v398_v12  ;;  %v428_v21 = vrot.slane %v427_v6, 2 }
 0x173   :  { %v401_v22 = vrot.slane %v400_v10, 1  ;;  %v429_v23 = vadd.f32 %v428_v21, %v427_v6 }
 0x175   :  { %v430_v24 = vrot.slane %v429_v23, 1  ;;  %v402_v25 = vadd.f32 %v401_v22, %v400_v10 }
 0x177   :  { %v431_v26 = vadd.f32 %v430_v24, %v429_v23 }
 0x179   :  { %v433_v27 = vsel %vm432_vm14, %v402_v25, %v431_v26 }
 0x17a   :  { %435 = vst.msk [vmem:[#allocation2] sm:$0x3] %vm434_vm15, %v433_v27 }
 0x17b   :  { %500 = shalt.err (!%p497_p4)
}
 0x17c   :  { %s501_s25 = scalar_lea.hbm %s751_s3, 32 }
 0x17d   :  { %p502_p5 = scmp.ne.s32.totalorder %s751_s3, %s501_s25  ;;  %p505_p6 = scmp.lt.u32.totalorder %s501_s25, %s751_s3 }
 0x17f   :  { %p507_p7 = pnand %p505_p6, %p502_p5 }
 0x181   :  { %510 = shalt.err (!%p507_p7)
}
 0x182   :  { %447 = dma.vmem_to_hbm [thread:$0]  %s445_s21, 32, %s751_s3, [#allocation3]  }
 0x183   :  { %511 = dma.done.wait [#allocation3], 32  }
 0x184   :  { %512 = vsyncadd [#allocation3], 4294967264 }
 0x185   :  { %453 = vsyncpa [#allocation3], 1 }

</bundles_post_ra>
